<compile_context>
chip_gen: v7x
topology: tpu7x:2x2x1
jax: 0.10.0
libtpu: 0.0.40
codegen_flags: <defaults>
</compile_context>

<pallas_src>
import jax
import jax.numpy as jnp
from jax.experimental import pallas as pl
from jax.experimental.pallas import tpu as pltpu


LANE = 128
_MAX_TILE_M = 16384  # well past the flat part of the HBM-roofline curve on all gens


def _round_up(x, m):
    return (x + m - 1) // m * m


def _vmem_limit_bytes():
    """Generation-aware scoped-VMEM limit: half of physical, defensively clamped."""
    cap = 64 * 1024 * 1024  # conservative (v7x per-TC) fallback
    try:
        cap = int(pltpu.get_tpu_info().vmem_capacity_bytes)
    except Exception:
        pass
    cap = min(cap, 128 * 1024 * 1024)   # guard against per-chip (multi-TC) reporting
    return max(min(cap // 2, 64 * 1024 * 1024), 16 * 1024 * 1024)


def _pick_tile_m(m_rows, k, e, in_bytes, out_bytes, vmem_limit):
    """Largest row tile whose real VMEM footprint (padding + double buffers) fits."""
    sub = max(8, 32 // in_bytes)          # sublane packing: f32 -> 8, bf16 -> 16
    k_pad = _round_up(k, sub)             # x tile sublane padding (lane axis is dense)
    e_lanes = _round_up(e, LANE)          # out tile lane padding (VMEM only, not HBM)
    # Resident (constant-index) weight + bias are still double-buffered by default.
    resident = 2 * k_pad * e_lanes * in_bytes + 2 * 8 * e_lanes * 4
    budget = vmem_limit // 2 - resident   # headroom for Mosaic internal scratch etc.
    per_row = 2 * k_pad * in_bytes + 2 * e_lanes * out_bytes  # dbl-buffered x col + out row
    tile = budget // max(per_row, 1)
    tile = max(min(tile, _MAX_TILE_M), LANE)
    tile = (tile // LANE) * LANE          # multiple of 128 keeps a ragged tail block legal
    return min(m_rows, tile)              # == m_rows (full dim, always legal) when M is small


def _patch_embed_kernel(xt_ref, w_ref, b_ref, o_ref):
    # xt_ref: (K, TILE_M)   w_ref: (K, E)   b_ref: (1, E)   o_ref: (TILE_M, E)
    acc = jax.lax.dot_general(
        xt_ref[...], w_ref[...],
        dimension_numbers=(((0,), (0,)), ((), ())),   # contract K on both -> (TILE_M, E)
        preferred_element_type=jnp.float32,
    )
    o_ref[...] = (acc + b_ref[...]).astype(o_ref.dtype)


def patch_embed(x, weight, bias, patch_size, *, compute_dtype=None, out_dtype=None):
    """x: (B, C, L), weight: (E, C, P), bias: (E,) -> (B, L // P, E)."""
    B, C, L = x.shape
    E, Cw, P = weight.shape
    assert C == Cw and P == patch_size and L % P == 0
    num_patches = L // P
    M = B * num_patches
    K = C * P
    cdt = jnp.dtype(x.dtype if compute_dtype is None else compute_dtype)
    odt = jnp.dtype(cdt if out_dtype is None else out_dtype)

    # ---- layout glue (fusible XLA ops; nothing padded or force-materialized) ----
    # Lane axis = rows (M), so the tiny contraction dim K = C*P sits on sublanes:
    # dense VMEM tiles and long contiguous DMA rows even for K << 128.
    x_t = (x.astype(cdt)
             .reshape(B, C, num_patches, P)
             .transpose(1, 3, 0, 2)                   # (C, P, B, num_patches)
             .reshape(K, M))                          # row = c*P + k, col = b*np + p
    w_flat = weight.reshape(E, K).T.astype(cdt)       # (K, E); same c*P + k feature order
    b_row = bias.astype(jnp.float32).reshape(1, E)    # f32 add before the output cast

    in_bytes = jnp.dtype(cdt).itemsize
    out_bytes = jnp.dtype(odt).itemsize
    vmem_limit = _vmem_limit_bytes()
    tile_m = _pick_tile_m(M, K, E, in_bytes, out_bytes, vmem_limit)
    grid = (pl.cdiv(M, tile_m),)                      # ragged tail masked by Pallas

    cost = pl.CostEstimate(
        flops=2 * M * K * E,
        bytes_accessed=(M * K * in_bytes + K * E * in_bytes + E * 4
                        + M * E * out_bytes),
        transcendentals=0,
    )

    out = pl.pallas_call(
        _patch_embed_kernel,
        out_shape=jax.ShapeDtypeStruct((M, E), odt),
        grid=grid,
        in_specs=[
            # streamed: one lane-dense (K, tile_m) block per step (auto double-buffered)
            pl.BlockSpec((K, tile_m), lambda i: (0, i)),
            # resident across the grid: constant block index -> no re-DMA per step
            pl.BlockSpec((K, E), lambda i: (0, 0)),
            pl.BlockSpec((1, E), lambda i: (0, 0)),
        ],
        out_specs=pl.BlockSpec((tile_m, E), lambda i: (i, 0)),
        compiler_params=pltpu.CompilerParams(
            dimension_semantics=("parallel",),         # row tiles shard across v7x's 2 TCs
            vmem_limit_bytes=int(vmem_limit),
            # Let XLA fold the im2col cast+transpose into the kernel's input handling
            # instead of materializing x_t in HBM (reviewer's main traffic item).
            allow_input_fusion=[True, False, False],
        ),
        cost_estimate=cost,
    )(x_t, w_flat, b_row)

    return out.reshape(B, num_patches, E)              # free row-major metadata reshape


if __name__ == "__main__":
    # Small shapes consistent with the module's 1D forward:
    # img_size (=L) = 16, patch_size = 4, in_chans = 4, embed_dim = 32, batch = 2
    B, C, L = 2, 4, 16
    patch_size = 4
    embed_dim = 32

    key = jax.random.PRNGKey(0)
    kx, kw, kb = jax.random.split(key, 3)
    x = jax.random.normal(kx, (B, C, L), dtype=jnp.float32)
    fan_in = C * patch_size
    weight = jax.random.normal(kw, (embed_dim, C, patch_size), dtype=jnp.float32) / jnp.sqrt(fan_in)
    bias = jax.random.normal(kb, (embed_dim,), dtype=jnp.float32) * 0.01

    def conv_ref(xa, wa):
        y = jax.lax.conv_general_dilated(
            xa, wa,
            window_strides=(patch_size,), padding="VALID",
            dimension_numbers=("NCH", "OIH", "NCH"),
            precision=jax.lax.Precision.HIGHEST,
        )
        return y.transpose(0, 2, 1) + bias.reshape(1, 1, embed_dim)

    # TODO(synk): norm_layer=None in the default module config, so no norm is applied here.

    # f32 path (matches the PyTorch module's f32 Conv1d forward).
    y = patch_embed(x, weight, bias, patch_size)
    jax.block_until_ready(y)
    ref = conv_ref(x, weight)
    assert y.shape == (B, L // patch_size, embed_dim)
    assert y.dtype == jnp.float32
    assert jnp.allclose(y, ref, atol=1e-4, rtol=1e-4)

    # bf16 streaming path: halves streamed input AND output bytes (biggest relative
    # win on v5e's ~0.82 TB/s HBM); accumulation stays f32 on the MXU.
    y_bf = patch_embed(x, weight, bias, patch_size, compute_dtype=jnp.bfloat16)
    jax.block_until_ready(y_bf)
    ref_bf = conv_ref(x.astype(jnp.bfloat16).astype(jnp.float32),
                      weight.astype(jnp.bfloat16).astype(jnp.float32))
    assert y_bf.dtype == jnp.bfloat16
    assert jnp.allclose(y_bf.astype(jnp.float32), ref_bf, atol=2e-2, rtol=2e-2)

    print("KERNEL_OK")
</pallas_src>

<mosaic_0001>
module attributes {stable_mosaic.version = 11 : i64} {
  func.func @_patch_embed_kernel(%arg0: i32, %arg1: memref<16x8xf32, #tpu.memory_space<vmem>>, %arg2: memref<16x32xf32, #tpu.memory_space<vmem>>, %arg3: memref<1x32xf32, #tpu.memory_space<vmem>>, %arg4: memref<8x32xf32, #tpu.memory_space<vmem>>) attributes {dimension_semantics = [#tpu.dimension_semantics<parallel>], iteration_bounds = array<i64: 1>, scalar_prefetch = 0 : i64, scratch_operands = 0 : i64, tpu.core_type = #tpu.core_type<tc>, window_params = [{transform_indices = @transform_0, window_bounds = array<i64: 16, 8>}, {pipeline_mode = #tpu.pipeline_mode<synchronous>, transform_indices = @transform_1, window_bounds = array<i64: 16, 32>}, {pipeline_mode = #tpu.pipeline_mode<synchronous>, transform_indices = @transform_2, window_bounds = array<i64: 1, 32>}, {transform_indices = @transform_3, window_bounds = array<i64: 8, 32>}]} {
    %c0 = arith.constant 0 : index
    %c0_0 = arith.constant 0 : index
    %0 = vector.load %arg1[%c0, %c0_0] : memref<16x8xf32, #tpu.memory_space<vmem>>, vector<16x8xf32>
    %c0_1 = arith.constant 0 : index
    %c0_2 = arith.constant 0 : index
    %1 = vector.load %arg2[%c0_1, %c0_2] : memref<16x32xf32, #tpu.memory_space<vmem>>, vector<16x32xf32>
    %cst = arith.constant dense<0.000000e+00> : vector<8x32xf32>
    %2 = tpu.matmul %0, %1, %cst {dimension_numbers = #tpu.dot_dimension_numbers<[0], [0], [1], [1], [0, 1, 1, 1], [], []>} : vector<16x8xf32>, vector<16x32xf32>, vector<8x32xf32> -> vector<8x32xf32>
    %c0_3 = arith.constant 0 : index
    %c0_4 = arith.constant 0 : index
    %3 = vector.load %arg3[%c0_3, %c0_4] : memref<1x32xf32, #tpu.memory_space<vmem>>, vector<1x32xf32>
    %4 = vector.broadcast %3 : vector<1x32xf32> to vector<8x32xf32>
    %5 = arith.addf %2, %4 : vector<8x32xf32>
    %c0_5 = arith.constant 0 : index
    %c0_6 = arith.constant 0 : index
    %6 = vector.load %arg4[%c0_5, %c0_6] : memref<8x32xf32, #tpu.memory_space<vmem>>, vector<8x32xf32>
    tpu.vector_store %arg4[%c0_5, %c0_6], %5 {strides = array<i32>} : memref<8x32xf32, #tpu.memory_space<vmem>>, vector<8x32xf32>,
    return
  }
  func.func @transform_0(%arg0: i32) -> (i32, i32) {
    %c0_i32 = arith.constant 0 : i32
    %c0_i32_0 = arith.constant 0 : i32
    return %c0_i32, %arg0 : i32, i32
  }
  func.func @transform_1(%arg0: i32) -> (i32, i32) {
    %c0_i32 = arith.constant 0 : i32
    %c0_i32_0 = arith.constant 0 : i32
    %c0_i32_1 = arith.constant 0 : i32
    return %c0_i32, %c0_i32_0 : i32, i32
  }
  func.func @transform_2(%arg0: i32) -> (i32, i32) {
    %c0_i32 = arith.constant 0 : i32
    %c0_i32_0 = arith.constant 0 : i32
    %c0_i32_1 = arith.constant 0 : i32
    return %c0_i32, %c0_i32_0 : i32, i32
  }
  func.func @transform_3(%arg0: i32) -> (i32, i32) {
    %c0_i32 = arith.constant 0 : i32
    %c0_i32_0 = arith.constant 0 : i32
    return %arg0, %c0_i32 : i32, i32
  }
}

</mosaic_0001>

<bundles_post_ra>
// kernel: tpu_custom_call.1
= control target key start
LH: loop header
LB: loop body
LE: loop exit
PB: predicated region body
PF: predicated region fallthrough
CT: control target
= control target key end

     0   :  { %v191_v2 = vmov 0.0|0.0   ;;  %s242_s0 = inlined_call_operand.vmem [shape: f32[16,8], index: 0, kind: input, shape index: {}]   ;;  %s243_s1 = inlined_call_operand.vmem [shape: f32[16,32], index: 1, kind: input, shape index: {}]   ;;  %s244_s2 = inlined_call_operand.vmem [shape: f32[1,32], index: 2, kind: input, shape index: {}]   ;;  %s245_s3 = inlined_call_operand.hbm [shape: f32[8,32], index: 3, kind: output, shape index: {}]  }
   0x1   :  { %v15_v0 = vld [vmem:[%s242_s0] sm:$0xff]  ;;  %160 = vmatprep.subr.bf16.mxu0 %v191_v2  ;;  %v18_v3 = vld [vmem:[%s243_s1 + $0x8] sm:$0xff] }
   0x2   :  { %v17_v1 = vld [vmem:[%s243_s1] sm:$0xff]  ;;  %26 = vxpose.xlu0.b32.start [1/2] (short) (narrow) %v15_v0, 8 }
   0x3   :  { %8 = vsyncpa [#allocation3], 0  ;;  %v16_v4 = vld [vmem:[%s242_s0 + $0x8] sm:$0xff]  ;;  %v161_v5 = vpack.c.bf16 %v18_v3, %v17_v1  ;;  %vm192_vm0 = vmmov 0   ;;  %v193_v6 = vmov 0.0   ;;  %vm58_vm1 = vcmask 130048  }
   0x4   :  { %157 = vmatprep.mubr.msk.f32.mxu0 %vm192_vm0, %v193_v6  ;;  %v148_v8 = vld [vmem:[%s244_s2] ss:$0 sm:$0xff]  ;;  %s194_s22 = smov [#allocation2]   ;;  %vm132_vm2 = vcmask 261120  }
   0x5   :  { %162 = vmatpush3.bf16.msra.mxu0 %v161_v5  ;;  %s140_s1 = sshll.u32 %s194_s22, 4  ;;  %s141_s1 = int_to_ptr.vmem [resolvable:$true] %s140_s1 }
   0x6   :  { %27 = vxpose.xlu0.b32.end [2/2] (short) (narrow) %v16_v4, 8  ;;  %s167_s0 = scalar_lea.vmem %s141_s1, 128  ;;  %p172_p1 = scmp.lt.s32.totalorder %s141_s1, %s141_s1 }
   0x7   :  { %p168_p0 = scmp.ne.s32.totalorder %s141_s1, %s167_s0  ;;  %p173_p2 = scmp.lt.s32.totalorder %s167_s0, %s167_s0 }
   0x9   :  { %p174_p3 = por %p173_p2, %p172_p1 }
   0xb   :  { %p175_p4 = pnand %p174_p3, %p168_p0 }
  0x82   :  { %v42_v7 = vpop.trf.xlu0 }
  0x83   :  { %158 = vmatmul.mubr.msk.f32.vlgmr.msra.gmra.mrb[0].mxu0 %vm58_vm1, %v42_v7 }
 0x156   :  { %v128_v9 = vpop.f32.mrb[0].mxu0 }
 0x157   :  { %v129_v10 = vadd.f32 %v148_v8, %v128_v9  ;;  %v159_v11 = vpop.f32.mrb[1].mxu0 }
 0x159   :  { %133 = vst.msk [vmem:[#allocation2] sm:$0xff] %vm132_vm2, %v129_v10 }
 0x15a   :  { %178 = shalt.err (!%p175_p4)
}
 0x15b   :  { %s179_s25 = scalar_lea.hbm %s245_s3, 128 }
 0x15c   :  { %p180_p5 = scmp.ne.s32.totalorder %s245_s3, %s179_s25  ;;  %p183_p6 = scmp.lt.u32.totalorder %s179_s25, %s245_s3 }
 0x15e   :  { %p185_p7 = pnand %p183_p6, %p180_p5 }
 0x160   :  { %188 = shalt.err (!%p185_p7)
}
 0x161   :  { %143 = dma.vmem_to_hbm [thread:$0]  %s141_s1, 128, %s245_s3, [#allocation3]  }
 0x162   :  { %189 = dma.done.wait [#allocation3], 128  }
 0x163   :  { %190 = vsyncadd [#allocation3], 4294967168 }
 0x164   :  { %147 = vsyncpa [#allocation3], 1 }

</bundles_post_ra>
